<compile_context>
chip_gen: v7x
topology: tpu7x:2x2x1
jax: 0.10.0
libtpu: 0.0.40
codegen_flags: <defaults>
</compile_context>

<pallas_src>
import math
import functools

import jax
import jax.numpy as jnp
from jax import lax
from jax.experimental import pallas as pl
from jax.experimental.pallas import tpu as pltpu


VMEM_LIMIT_BYTES = 48 * 1024 * 1024   # > 16/32 MiB scoped defaults, < 64 MiB (v7x physical)


# ----------------------------------------------------------------------------
# Kernel 1: generic dense layer  y = x @ Wt + b   (x flattened to (M, K))
# ----------------------------------------------------------------------------
def linear_kernel(x_ref, wt_ref, b_ref, o_ref):
    # x_ref: (tm, K), wt_ref: (K, N), b_ref: (1, N), o_ref: (tm, N)
    y = jnp.dot(x_ref[...], wt_ref[...], preferred_element_type=jnp.float32)
    o_ref[...] = y + b_ref[...]


def linear(x2d, wt, b2d):
    """x2d: (M, K); wt: (K, N) (already transposed); b2d: (1, N)."""
    M, K = x2d.shape
    N = wt.shape[1]
    tm = M if M <= 256 else 256
    return pl.pallas_call(
        linear_kernel,
        out_shape=jax.ShapeDtypeStruct((M, N), jnp.float32),
        grid_spec=pltpu.PrefetchScalarGridSpec(
            num_scalar_prefetch=0,
            grid=(pl.cdiv(M, tm),),
            in_specs=[
                pl.BlockSpec((tm, K), lambda i: (i, 0)),
                pl.BlockSpec((K, N), lambda i: (0, 0)),
                pl.BlockSpec((1, N), lambda i: (0, 0)),
            ],
            out_specs=pl.BlockSpec((tm, N), lambda i: (i, 0)),
        ),
        compiler_params=pltpu.CompilerParams(
            dimension_semantics=("parallel",),
            vmem_limit_bytes=VMEM_LIMIT_BYTES),
    )(x2d, wt, b2d)


# ----------------------------------------------------------------------------
# Kernel 2: fused Q/K/V projection for self-attention.
# One grid axis over M-tiles of x, one over the 3 projections.  The x tile's
# block index ignores the projection axis, so Pallas re-uses the already-resident
# x tile across the three weight matrices (x is read from HBM once per tile).
# ----------------------------------------------------------------------------
def qkv_linear_kernel(x_ref, wt_ref, b_ref, o_ref):
    # x_ref: (tm, D), wt_ref: (1, D, D), b_ref: (1, 1, D), o_ref: (1, tm, D)
    y = jnp.dot(x_ref[...], wt_ref[0], preferred_element_type=jnp.float32)
    o_ref[0] = y + b_ref[0]


def qkv_projection(query, key, value, wqkv_t, bqkv, *, self_attention):
    """Returns stacked projections of shape (3, B, S, D)."""
    B, S, D = query.shape
    M = B * S
    tm = M if M <= 256 else 256

    if self_attention:
        x = query.reshape(M, D)
        out = pl.pallas_call(
            qkv_linear_kernel,
            out_shape=jax.ShapeDtypeStruct((3, M, D), jnp.float32),
            grid_spec=pltpu.PrefetchScalarGridSpec(
                num_scalar_prefetch=0,
                grid=(pl.cdiv(M, tm), 3),
                in_specs=[
                    pl.BlockSpec((tm, D), lambda i, p: (i, 0)),
                    pl.BlockSpec((1, D, D), lambda i, p: (p, 0, 0)),
                    pl.BlockSpec((1, 1, D), lambda i, p: (p, 0, 0)),
                ],
                out_specs=pl.BlockSpec((1, tm, D), lambda i, p: (p, i, 0)),
            ),
            compiler_params=pltpu.CompilerParams(
                dimension_semantics=("parallel", "arbitrary"),
                vmem_limit_bytes=VMEM_LIMIT_BYTES),
        )(x, wqkv_t, bqkv)
    else:
        # General (cross-attention style) path: three independent projections.
        outs = [
            linear(t.reshape(M, D), wqkv_t[i], bqkv[i])
            for i, t in enumerate((query, key, value))
        ]
        out = jnp.stack(outs, axis=0)

    return out.reshape(3, B, S, D)


# ----------------------------------------------------------------------------
# Kernel 3: scaled dot-product attention, all heads of one batch per grid step.
# Heads are sliced out of the D axis inside the kernel; the merged-head (S, D)
# output slab is written lane-dense.  p_attn stays in VMEM/vregs only.
# ----------------------------------------------------------------------------
def attention_kernel(qkv_ref, mask_ref, o_ref, *, num_heads):
    # qkv_ref: (3, 1, S, D), mask_ref: (1, 1, S, S), o_ref: (1, S, D)
    q = qkv_ref[0, 0]                                  # (S, D)
    k = qkv_ref[1, 0]                                  # (S, D)
    v = qkv_ref[2, 0]                                  # (S, D)
    keep = mask_ref[0, 0] != 0                         # (S, S); 0 => masked out

    S, D = q.shape
    d_k = D // num_heads
    scale = jnp.float32(1.0 / math.sqrt(d_k))
    neg_inf = jnp.float32(-1.0e9)
    # contract the last dims of q and k (q @ k^T) without transposing k
    dn = (((1,), (1,)), ((), ()))

    ctx_heads = []
    for h in range(num_heads):
        lo = h * d_k
        qh = q[:, lo:lo + d_k]
        kh = k[:, lo:lo + d_k]
        vh = v[:, lo:lo + d_k]

        s = lax.dot_general(qh, kh, dn, preferred_element_type=jnp.float32) * scale
        s = jnp.where(keep, s, neg_inf)

        # numerically-stable softmax along the last axis (p_attn never leaves the chip)
        s_max = jnp.max(s, axis=-1, keepdims=True)
        p = jnp.exp(s - s_max)
        p = p * pl.reciprocal(jnp.sum(p, axis=-1, keepdims=True), approx=True)

        ctx_heads.append(jnp.dot(p, vh, preferred_element_type=jnp.float32))

    # merged-head, lane-dense output slab
    o_ref[0] = jnp.concatenate(ctx_heads, axis=-1)


def scaled_dot_product_attention(qkv, mask, num_heads):
    """qkv: (3, B, S, D); mask: (B, 1, S, S). Returns merged-head context (B, S, D)."""
    _, B, S, D = qkv.shape
    kern = functools.partial(attention_kernel, num_heads=num_heads)
    return pl.pallas_call(
        kern,
        out_shape=jax.ShapeDtypeStruct((B, S, D), jnp.float32),
        grid_spec=pltpu.PrefetchScalarGridSpec(
            num_scalar_prefetch=0,
            grid=(B,),
            in_specs=[
                pl.BlockSpec((3, 1, S, D), lambda b: (0, b, 0, 0)),
                pl.BlockSpec((1, 1, S, S), lambda b: (b, 0, 0, 0)),
            ],
            out_specs=pl.BlockSpec((1, S, D), lambda b: (b, 0, 0)),
        ),
        compiler_params=pltpu.CompilerParams(
            dimension_semantics=("parallel",),
            vmem_limit_bytes=VMEM_LIMIT_BYTES),
    )(qkv, mask)


# ----------------------------------------------------------------------------
# MultiHeadedAttention forward (glue in plain JAX, hot paths in Pallas)
# ----------------------------------------------------------------------------
def multi_headed_attention(prepared, query, key, value, mask, *,
                           num_heads, self_attention=None):
    B, S, D = query.shape
    assert D % num_heads == 0

    if self_attention is None:
        # (object identity only meaningful outside jit; pass explicitly under jit)
        self_attention = (query is key) and (key is value)

    if mask is None:
        mask = jnp.ones((B, 1, S, S), jnp.float32)

    # fused Q/K/V projection -> (3, B, S, D)
    qkv = qkv_projection(query, key, value, prepared["wqkv_t"], prepared["bqkv"],
                         self_attention=self_attention)

    # attention with in-kernel head split/merge -> (B, S, D)
    ctx = scaled_dot_product_attention(qkv, mask, num_heads)

    # output projection
    out = linear(ctx.reshape(B * S, D), prepared["wo_t"], prepared["bo"])
    return out.reshape(B, S, D)


# ----------------------------------------------------------------------------
# Parameters
# ----------------------------------------------------------------------------
def init_params(key, dim_model):
    """Deterministic init mimicking nn.Linear default: U(-1/sqrt(in), 1/sqrt(in)).
    Weights kept in PyTorch layout (D_out, D_in)."""
    bound = 1.0 / math.sqrt(dim_model)
    keys = jax.random.split(key, 8)
    u = lambda k, shape: jax.random.uniform(k, shape, jnp.float32, -bound, bound)
    return {
        "wq": u(keys[0], (dim_model, dim_model)), "bq": u(keys[1], (dim_model,)),
        "wk": u(keys[2], (dim_model, dim_model)), "bk": u(keys[3], (dim_model,)),
        "wv": u(keys[4], (dim_model, dim_model)), "bv": u(keys[5], (dim_model,)),
        "wo": u(keys[6], (dim_model, dim_model)), "bo": u(keys[7], (dim_model,)),
    }


def prepare_params(params):
    """One-time layout prep: transpose/stack weights so no per-call transposes are needed."""
    wqkv_t = jnp.stack([params["wq"].T, params["wk"].T, params["wv"].T], axis=0)  # (3, D, D)
    bqkv = jnp.stack([params["bq"], params["bk"], params["bv"]], axis=0)[:, None, :]  # (3, 1, D)
    return {
        "wqkv_t": wqkv_t,
        "bqkv": bqkv,
        "wo_t": params["wo"].T,          # (D, D)
        "bo": params["bo"][None, :],     # (1, D)
    }


# ----------------------------------------------------------------------------
# Pure-JAX reference for sanity checking
# ----------------------------------------------------------------------------
def reference(params, query, key, value, mask, num_heads):
    B, S, D = query.shape
    d_k = D // num_heads

    def lin(x, w, b):
        return jnp.einsum("bsd,od->bso", x, w) + b

    def split(x):
        return x.reshape(B, S, num_heads, d_k).transpose(0, 2, 1, 3)

    q = split(lin(query, params["wq"], params["bq"]))
    k = split(lin(key,   params["wk"], params["bk"]))
    v = split(lin(value, params["wv"], params["bv"]))
    scores = jnp.einsum("bhqd,bhkd->bhqk", q, k) / math.sqrt(d_k)
    scores = jnp.where(mask == 0, -1.0e9, scores)
    p = jax.nn.softmax(scores, axis=-1)
    ctx = jnp.einsum("bhqk,bhkd->bhqd", p, v)
    x = ctx.transpose(0, 2, 1, 3).reshape(B, S, D)
    return lin(x, params["wo"], params["bo"])


if __name__ == "__main__":
    B, S, D, H = 2, 8, 32, 4   # batch, seq, dim_model, num_heads  (d_k = 8)

    root = jax.random.PRNGKey(0)
    k_params, k_x, k_m, k_q, k_k, k_v = jax.random.split(root, 6)

    params = init_params(k_params, D)
    prepared = prepare_params(params)

    x = jax.random.normal(k_x, (B, S, D), jnp.float32)
    mask = (jax.random.uniform(k_m, (B, 1, S, S)) > 0.2).astype(jnp.float32)

    # --- self-attention (BERT4Rec usage), fused-QKV path -------------------
    @jax.jit
    def fwd_self(prepared, x, mask):
        return multi_headed_attention(prepared, x, x, x, mask,
                                      num_heads=H, self_attention=True)

    out = jax.block_until_ready(fwd_self(prepared, x, mask))
    ref = reference(params, x, x, x, mask, H)
    assert out.shape == (B, S, D)
    assert jnp.allclose(out, ref, atol=2e-3, rtol=2e-3), \
        float(jnp.max(jnp.abs(out - ref)))

    # --- general (distinct q/k/v) path --------------------------------------
    q_in = jax.random.normal(k_q, (B, S, D), jnp.float32)
    k_in = jax.random.normal(k_k, (B, S, D), jnp.float32)
    v_in = jax.random.normal(k_v, (B, S, D), jnp.float32)

    fwd_cross = jax.jit(functools.partial(multi_headed_attention,
                                          num_heads=H, self_attention=False))
    out2 = jax.block_until_ready(fwd_cross(prepared, q_in, k_in, v_in, mask))
    ref2 = reference(params, q_in, k_in, v_in, mask, H)
    assert jnp.allclose(out2, ref2, atol=2e-3, rtol=2e-3), \
        float(jnp.max(jnp.abs(out2 - ref2)))

    print("KERNEL_OK")
</pallas_src>

<mosaic_0001>
module attributes {stable_mosaic.version = 11 : i64} {
  func.func @linear_kernel(%arg0: i32, %arg1: memref<16x32xf32, #tpu.memory_space<vmem>>, %arg2: memref<32x32xf32, #tpu.memory_space<vmem>>, %arg3: memref<1x32xf32, #tpu.memory_space<vmem>>, %arg4: memref<16x32xf32, #tpu.memory_space<vmem>>) attributes {dimension_semantics = [#tpu.dimension_semantics<parallel>], iteration_bounds = array<i64: 1>, scalar_prefetch = 0 : i64, scratch_operands = 0 : i64, tpu.core_type = #tpu.core_type<tc>, window_params = [{transform_indices = @transform_0, window_bounds = array<i64: 16, 32>}, {pipeline_mode = #tpu.pipeline_mode<synchronous>, transform_indices = @transform_1, window_bounds = array<i64: 32, 32>}, {pipeline_mode = #tpu.pipeline_mode<synchronous>, transform_indices = @transform_2, window_bounds = array<i64: 1, 32>}, {transform_indices = @transform_3, window_bounds = array<i64: 16, 32>}]} {
    %c0 = arith.constant 0 : index
    %c0_0 = arith.constant 0 : index
    %0 = vector.load %arg1[%c0, %c0_0] : memref<16x32xf32, #tpu.memory_space<vmem>>, vector<16x32xf32>
    %c0_1 = arith.constant 0 : index
    %c0_2 = arith.constant 0 : index
    %1 = vector.load %arg2[%c0_1, %c0_2] : memref<32x32xf32, #tpu.memory_space<vmem>>, vector<32x32xf32>
    %cst = arith.constant dense<0.000000e+00> : vector<16x32xf32>
    %2 = tpu.matmul %0, %1, %cst {dimension_numbers = #tpu.dot_dimension_numbers<[1], [0], [0], [1], [0, 0, 1, 1], [], []>} : vector<16x32xf32>, vector<32x32xf32>, vector<16x32xf32> -> vector<16x32xf32>
    %c0_3 = arith.constant 0 : index
    %c0_4 = arith.constant 0 : index
    %3 = vector.load %arg3[%c0_3, %c0_4] : memref<1x32xf32, #tpu.memory_space<vmem>>, vector<1x32xf32>
    %4 = vector.broadcast %3 : vector<1x32xf32> to vector<16x32xf32>
    %5 = arith.addf %2, %4 : vector<16x32xf32>
    %c0_5 = arith.constant 0 : index
    %c0_6 = arith.constant 0 : index
    %6 = vector.load %arg4[%c0_5, %c0_6] : memref<16x32xf32, #tpu.memory_space<vmem>>, vector<16x32xf32>
    tpu.vector_store %arg4[%c0_5, %c0_6], %5 {strides = array<i32>} : memref<16x32xf32, #tpu.memory_space<vmem>>, vector<16x32xf32>,
    return
  }
  func.func @transform_0(%arg0: i32) -> (i32, i32) {
    %c0_i32 = arith.constant 0 : i32
    %c0_i32_0 = arith.constant 0 : i32
    return %arg0, %c0_i32 : i32, i32
  }
  func.func @transform_1(%arg0: i32) -> (i32, i32) {
    %c0_i32 = arith.constant 0 : i32
    %c0_i32_0 = arith.constant 0 : i32
    %c0_i32_1 = arith.constant 0 : i32
    return %c0_i32, %c0_i32_0 : i32, i32
  }
  func.func @transform_2(%arg0: i32) -> (i32, i32) {
    %c0_i32 = arith.constant 0 : i32
    %c0_i32_0 = arith.constant 0 : i32
    %c0_i32_1 = arith.constant 0 : i32
    return %c0_i32, %c0_i32_0 : i32, i32
  }
  func.func @transform_3(%arg0: i32) -> (i32, i32) {
    %c0_i32 = arith.constant 0 : i32
    %c0_i32_0 = arith.constant 0 : i32
    return %arg0, %c0_i32 : i32, i32
  }
}

module attributes {stable_mosaic.version = 11 : i64} {
  func.func @attention_kernel(%arg0: i32, %arg1: memref<3x1x8x32xf32, #tpu.memory_space<vmem>>, %arg2: memref<1x1x8x8xf32, #tpu.memory_space<vmem>>, %arg3: memref<1x8x32xf32, #tpu.memory_space<vmem>>) attributes {dimension_semantics = [#tpu.dimension_semantics<parallel>], iteration_bounds = array<i64: 2>, scalar_prefetch = 0 : i64, scratch_operands = 0 : i64, tpu.core_type = #tpu.core_type<tc>, window_params = [{transform_indices = @transform_0, window_bounds = array<i64: 3, 1, 8, 32>}, {transform_indices = @transform_1, window_bounds = array<i64: 1, 1, 8, 8>}, {transform_indices = @transform_2, window_bounds = array<i64: 1, 8, 32>}]} {
    %c0 = arith.constant 0 : index
    %c0_0 = arith.constant 0 : index
    %c0_1 = arith.constant 0 : index
    %c0_2 = arith.constant 0 : index
    %0 = vector.load %arg1[%c0, %c0_0, %c0_1, %c0_2] : memref<3x1x8x32xf32, #tpu.memory_space<vmem>>, vector<1x1x8x32xf32>
    %1 = vector.shape_cast %0 : vector<1x1x8x32xf32> to vector<8x32xf32>
    %c1 = arith.constant 1 : index
    %c0_3 = arith.constant 0 : index
    %c0_4 = arith.constant 0 : index
    %c0_5 = arith.constant 0 : index
    %2 = vector.load %arg1[%c1, %c0_3, %c0_4, %c0_5] : memref<3x1x8x32xf32, #tpu.memory_space<vmem>>, vector<1x1x8x32xf32>
    %3 = vector.shape_cast %2 : vector<1x1x8x32xf32> to vector<8x32xf32>
    %c2 = arith.constant 2 : index
    %c0_6 = arith.constant 0 : index
    %c0_7 = arith.constant 0 : index
    %c0_8 = arith.constant 0 : index
    %4 = vector.load %arg1[%c2, %c0_6, %c0_7, %c0_8] : memref<3x1x8x32xf32, #tpu.memory_space<vmem>>, vector<1x1x8x32xf32>
    %5 = vector.shape_cast %4 : vector<1x1x8x32xf32> to vector<8x32xf32>
    %c0_9 = arith.constant 0 : index
    %c0_10 = arith.constant 0 : index
    %c0_11 = arith.constant 0 : index
    %c0_12 = arith.constant 0 : index
    %6 = vector.load %arg2[%c0_9, %c0_10, %c0_11, %c0_12] : memref<1x1x8x8xf32, #tpu.memory_space<vmem>>, vector<1x1x8x8xf32>
    %7 = vector.shape_cast %6 : vector<1x1x8x8xf32> to vector<8x8xf32>
    %cst = arith.constant 0.000000e+00 : f32
    %8 = vector.broadcast %cst : f32 to vector<8x8xf32>
    %9 = arith.cmpf one, %7, %8 : vector<8x8xf32>
    %10 = vector.extract_strided_slice %1 {offsets = [0, 0], sizes = [8, 8], strides = [1, 1]} : vector<8x32xf32> to vector<8x8xf32>
    %11 = vector.extract_strided_slice %3 {offsets = [0, 0], sizes = [8, 8], strides = [1, 1]} : vector<8x32xf32> to vector<8x8xf32>
    %12 = vector.extract_strided_slice %5 {offsets = [0, 0], sizes = [8, 8], strides = [1, 1]} : vector<8x32xf32> to vector<8x8xf32>
    %cst_13 = arith.constant dense<0.000000e+00> : vector<8x8xf32>
    %13 = tpu.matmul %10, %11, %cst_13 {dimension_numbers = #tpu.dot_dimension_numbers<[1], [1], [0], [0], [0, 0, 1, 0], [], []>} : vector<8x8xf32>, vector<8x8xf32>, vector<8x8xf32> -> vector<8x8xf32>
    %cst_14 = arith.constant 0.353553385 : f32
    %14 = vector.broadcast %cst_14 : f32 to vector<8x8xf32>
    %15 = arith.mulf %13, %14 : vector<8x8xf32>
    %cst_15 = arith.constant -1.000000e+09 : f32
    %16 = vector.broadcast %cst_15 : f32 to vector<8x8xf32>
    %17 = arith.select %9, %15, %16 : vector<8x8xi1>, vector<8x8xf32>
    %cst_16 = arith.constant dense<0xFF800000> : vector<8xf32>
    %18 = vector.multi_reduction <maximumf>, %17, %cst_16 [1] : vector<8x8xf32> to vector<8xf32>
    %19 = vector.shape_cast %18 : vector<8xf32> to vector<8x1xf32>
    %20 = vector.broadcast %19 : vector<8x1xf32> to vector<8x8xf32>
    %21 = arith.subf %17, %20 : vector<8x8xf32>
    %22 = math.exp %21 : vector<8x8xf32>
    %cst_17 = arith.constant dense<0.000000e+00> : vector<8xf32>
    %23 = vector.multi_reduction <add>, %22, %cst_17 [1] : vector<8x8xf32> to vector<8xf32>
    %24 = vector.shape_cast %23 : vector<8xf32> to vector<8x1xf32>
    %25 = tpu.reciprocal %24 {approx = true} : vector<8x1xf32> -> vector<8x1xf32>
    %26 = vector.broadcast %25 : vector<8x1xf32> to vector<8x8xf32>
    %27 = arith.mulf %22, %26 : vector<8x8xf32>
    %cst_18 = arith.constant dense<0.000000e+00> : vector<8x8xf32>
    %28 = tpu.matmul %27, %12, %cst_18 {dimension_numbers = #tpu.dot_dimension_numbers<[1], [0], [0], [1], [0, 0, 1, 1], [], []>} : vector<8x8xf32>, vector<8x8xf32>, vector<8x8xf32> -> vector<8x8xf32>
    %29 = vector.extract_strided_slice %1 {offsets = [0, 8], sizes = [8, 8], strides = [1, 1]} : vector<8x32xf32> to vector<8x8xf32>
    %30 = vector.extract_strided_slice %3 {offsets = [0, 8], sizes = [8, 8], strides = [1, 1]} : vector<8x32xf32> to vector<8x8xf32>
    %31 = vector.extract_strided_slice %5 {offsets = [0, 8], sizes = [8, 8], strides = [1, 1]} : vector<8x32xf32> to vector<8x8xf32>
    %cst_19 = arith.constant dense<0.000000e+00> : vector<8x8xf32>
    %32 = tpu.matmul %29, %30, %cst_19 {dimension_numbers = #tpu.dot_dimension_numbers<[1], [1], [0], [0], [0, 0, 1, 0], [], []>} : vector<8x8xf32>, vector<8x8xf32>, vector<8x8xf32> -> vector<8x8xf32>
    %cst_20 = arith.constant 0.353553385 : f32
    %33 = vector.broadcast %cst_20 : f32 to vector<8x8xf32>
    %34 = arith.mulf %32, %33 : vector<8x8xf32>
    %cst_21 = arith.constant -1.000000e+09 : f32
    %35 = vector.broadcast %cst_21 : f32 to vector<8x8xf32>
    %36 = arith.select %9, %34, %35 : vector<8x8xi1>, vector<8x8xf32>
    %cst_22 = arith.constant dense<0xFF800000> : vector<8xf32>
    %37 = vector.multi_reduction <maximumf>, %36, %cst_22 [1] : vector<8x8xf32> to vector<8xf32>
    %38 = vector.shape_cast %37 : vector<8xf32> to vector<8x1xf32>
    %39 = vector.broadcast %38 : vector<8x1xf32> to vector<8x8xf32>
    %40 = arith.subf %36, %39 : vector<8x8xf32>
    %41 = math.exp %40 : vector<8x8xf32>
    %cst_23 = arith.constant dense<0.000000e+00> : vector<8xf32>
    %42 = vector.multi_reduction <add>, %41, %cst_23 [1] : vector<8x8xf32> to vector<8xf32>
    %43 = vector.shape_cast %42 : vector<8xf32> to vector<8x1xf32>
    %44 = tpu.reciprocal %43 {approx = true} : vector<8x1xf32> -> vector<8x1xf32>
    %45 = vector.broadcast %44 : vector<8x1xf32> to vector<8x8xf32>
    %46 = arith.mulf %41, %45 : vector<8x8xf32>
    %cst_24 = arith.constant dense<0.000000e+00> : vector<8x8xf32>
    %47 = tpu.matmul %46, %31, %cst_24 {dimension_numbers = #tpu.dot_dimension_numbers<[1], [0], [0], [1], [0, 0, 1, 1], [], []>} : vector<8x8xf32>, vector<8x8xf32>, vector<8x8xf32> -> vector<8x8xf32>
    %48 = vector.extract_strided_slice %1 {offsets = [0, 16], sizes = [8, 8], strides = [1, 1]} : vector<8x32xf32> to vector<8x8xf32>
    %49 = vector.extract_strided_slice %3 {offsets = [0, 16], sizes = [8, 8], strides = [1, 1]} : vector<8x32xf32> to vector<8x8xf32>
    %50 = vector.extract_strided_slice %5 {offsets = [0, 16], sizes = [8, 8], strides = [1, 1]} : vector<8x32xf32> to vector<8x8xf32>
    %cst_25 = arith.constant dense<0.000000e+00> : vector<8x8xf32>
    %51 = tpu.matmul %48, %49, %cst_25 {dimension_numbers = #tpu.dot_dimension_numbers<[1], [1], [0], [0], [0, 0, 1, 0], [], []>} : vector<8x8xf32>, vector<8x8xf32>, vector<8x8xf32> -> vector<8x8xf32>
    %cst_26 = arith.constant 0.353553385 : f32
    %52 = vector.broadcast %cst_26 : f32 to vector<8x8xf32>
    %53 = arith.mulf %51, %52 : vector<8x8xf32>
    %cst_27 = arith.constant -1.000000e+09 : f32
    %54 = vector.broadcast %cst_27 : f32 to vector<8x8xf32>
    %55 = arith.select %9, %53, %54 : vector<8x8xi1>, vector<8x8xf32>
    %cst_28 = arith.constant dense<0xFF800000> : vector<8xf32>
    %56 = vector.multi_reduction <maximumf>, %55, %cst_28 [1] : vector<8x8xf32> to vector<8xf32>
    %57 = vector.shape_cast %56 : vector<8xf32> to vector<8x1xf32>
    %58 = vector.broadcast %57 : vector<8x1xf32> to vector<8x8xf32>
    %59 = arith.subf %55, %58 : vector<8x8xf32>
    %60 = math.exp %59 : vector<8x8xf32>
    %cst_29 = arith.constant dense<0.000000e+00> : vector<8xf32>
    %61 = vector.multi_reduction <add>, %60, %cst_29 [1] : vector<8x8xf32> to vector<8xf32>
    %62 = vector.shape_cast %61 : vector<8xf32> to vector<8x1xf32>
    %63 = tpu.reciprocal %62 {approx = true} : vector<8x1xf32> -> vector<8x1xf32>
    %64 = vector.broadcast %63 : vector<8x1xf32> to vector<8x8xf32>
    %65 = arith.mulf %60, %64 : vector<8x8xf32>
    %cst_30 = arith.constant dense<0.000000e+00> : vector<8x8xf32>
    %66 = tpu.matmul %65, %50, %cst_30 {dimension_numbers = #tpu.dot_dimension_numbers<[1], [0], [0], [1], [0, 0, 1, 1], [], []>} : vector<8x8xf32>, vector<8x8xf32>, vector<8x8xf32> -> vector<8x8xf32>
    %67 = vector.extract_strided_slice %1 {offsets = [0, 24], sizes = [8, 8], strides = [1, 1]} : vector<8x32xf32> to vector<8x8xf32>
    %68 = vector.extract_strided_slice %3 {offsets = [0, 24], sizes = [8, 8], strides = [1, 1]} : vector<8x32xf32> to vector<8x8xf32>
    %69 = vector.extract_strided_slice %5 {offsets = [0, 24], sizes = [8, 8], strides = [1, 1]} : vector<8x32xf32> to vector<8x8xf32>
    %cst_31 = arith.constant dense<0.000000e+00> : vector<8x8xf32>
    %70 = tpu.matmul %67, %68, %cst_31 {dimension_numbers = #tpu.dot_dimension_numbers<[1], [1], [0], [0], [0, 0, 1, 0], [], []>} : vector<8x8xf32>, vector<8x8xf32>, vector<8x8xf32> -> vector<8x8xf32>
    %cst_32 = arith.constant 0.353553385 : f32
    %71 = vector.broadcast %cst_32 : f32 to vector<8x8xf32>
    %72 = arith.mulf %70, %71 : vector<8x8xf32>
    %cst_33 = arith.constant -1.000000e+09 : f32
    %73 = vector.broadcast %cst_33 : f32 to vector<8x8xf32>
    %74 = arith.select %9, %72, %73 : vector<8x8xi1>, vector<8x8xf32>
    %cst_34 = arith.constant dense<0xFF800000> : vector<8xf32>
    %75 = vector.multi_reduction <maximumf>, %74, %cst_34 [1] : vector<8x8xf32> to vector<8xf32>
    %76 = vector.shape_cast %75 : vector<8xf32> to vector<8x1xf32>
    %77 = vector.broadcast %76 : vector<8x1xf32> to vector<8x8xf32>
    %78 = arith.subf %74, %77 : vector<8x8xf32>
    %79 = math.exp %78 : vector<8x8xf32>
    %cst_35 = arith.constant dense<0.000000e+00> : vector<8xf32>
    %80 = vector.multi_reduction <add>, %79, %cst_35 [1] : vector<8x8xf32> to vector<8xf32>
    %81 = vector.shape_cast %80 : vector<8xf32> to vector<8x1xf32>
    %82 = tpu.reciprocal %81 {approx = true} : vector<8x1xf32> -> vector<8x1xf32>
    %83 = vector.broadcast %82 : vector<8x1xf32> to vector<8x8xf32>
    %84 = arith.mulf %79, %83 : vector<8x8xf32>
    %cst_36 = arith.constant dense<0.000000e+00> : vector<8x8xf32>
    %85 = tpu.matmul %84, %69, %cst_36 {dimension_numbers = #tpu.dot_dimension_numbers<[1], [0], [0], [1], [0, 0, 1, 1], [], []>} : vector<8x8xf32>, vector<8x8xf32>, vector<8x8xf32> -> vector<8x8xf32>
    %86 = tpu.concatenate %28, %47, %66, %85 in 1 : vector<8x8xf32>, vector<8x8xf32>, vector<8x8xf32>, vector<8x8xf32> -> vector<8x32xf32>
    %c0_37 = arith.constant 0 : index
    %c0_38 = arith.constant 0 : index
    %c0_39 = arith.constant 0 : index
    %87 = vector.load %arg3[%c0_37, %c0_38, %c0_39] : memref<1x8x32xf32, #tpu.memory_space<vmem>>, vector<1x8x32xf32>
    %88 = vector.shape_cast %87 : vector<1x8x32xf32> to vector<8x32xf32>
    %89 = vector.shape_cast %86 : vector<8x32xf32> to vector<1x8x32xf32>
    tpu.vector_store %arg3[%c0_37, %c0_38, %c0_39], %89 {strides = array<i32>} : memref<1x8x32xf32, #tpu.memory_space<vmem>>, vector<1x8x32xf32>,
    return
  }
  func.func @transform_0(%arg0: i32) -> (i32, i32, i32, i32) {
    %c0_i32 = arith.constant 0 : i32
    %c0_i32_0 = arith.constant 0 : i32
    %c0_i32_1 = arith.constant 0 : i32
    %c0_i32_2 = arith.constant 0 : i32
    return %c0_i32, %arg0, %c0_i32_0, %c0_i32_1 : i32, i32, i32, i32
  }
  func.func @transform_1(%arg0: i32) -> (i32, i32, i32, i32) {
    %c0_i32 = arith.constant 0 : i32
    %c0_i32_0 = arith.constant 0 : i32
    %c0_i32_1 = arith.constant 0 : i32
    %c0_i32_2 = arith.constant 0 : i32
    return %arg0, %c0_i32, %c0_i32_0, %c0_i32_1 : i32, i32, i32, i32
  }
  func.func @transform_2(%arg0: i32) -> (i32, i32, i32) {
    %c0_i32 = arith.constant 0 : i32
    %c0_i32_0 = arith.constant 0 : i32
    %c0_i32_1 = arith.constant 0 : i32
    return %arg0, %c0_i32, %c0_i32_0 : i32, i32, i32
  }
}

module attributes {stable_mosaic.version = 11 : i64} {
  func.func @qkv_linear_kernel(%arg0: i32, %arg1: i32, %arg2: memref<16x32xf32, #tpu.memory_space<vmem>>, %arg3: memref<1x32x32xf32, #tpu.memory_space<vmem>>, %arg4: memref<1x1x32xf32, #tpu.memory_space<vmem>>, %arg5: memref<1x16x32xf32, #tpu.memory_space<vmem>>) attributes {dimension_semantics = [#tpu.dimension_semantics<parallel>, #tpu.dimension_semantics<arbitrary>], iteration_bounds = array<i64: 1, 3>, scalar_prefetch = 0 : i64, scratch_operands = 0 : i64, tpu.core_type = #tpu.core_type<tc>, window_params = [{transform_indices = @transform_0, window_bounds = array<i64: 16, 32>}, {transform_indices = @transform_1, window_bounds = array<i64: 1, 32, 32>}, {transform_indices = @transform_2, window_bounds = array<i64: 1, 1, 32>}, {transform_indices = @transform_3, window_bounds = array<i64: 1, 16, 32>}]} {
    %c0 = arith.constant 0 : index
    %c0_0 = arith.constant 0 : index
    %0 = vector.load %arg2[%c0, %c0_0] : memref<16x32xf32, #tpu.memory_space<vmem>>, vector<16x32xf32>
    %c0_1 = arith.constant 0 : index
    %c0_2 = arith.constant 0 : index
    %c0_3 = arith.constant 0 : index
    %1 = vector.load %arg3[%c0_1, %c0_2, %c0_3] : memref<1x32x32xf32, #tpu.memory_space<vmem>>, vector<1x32x32xf32>
    %2 = vector.shape_cast %1 : vector<1x32x32xf32> to vector<32x32xf32>
    %cst = arith.constant dense<0.000000e+00> : vector<16x32xf32>
    %3 = tpu.matmul %0, %2, %cst {dimension_numbers = #tpu.dot_dimension_numbers<[1], [0], [0], [1], [0, 0, 1, 1], [], []>} : vector<16x32xf32>, vector<32x32xf32>, vector<16x32xf32> -> vector<16x32xf32>
    %c0_4 = arith.constant 0 : index
    %c0_5 = arith.constant 0 : index
    %c0_6 = arith.constant 0 : index
    %4 = vector.load %arg4[%c0_4, %c0_5, %c0_6] : memref<1x1x32xf32, #tpu.memory_space<vmem>>, vector<1x1x32xf32>
    %5 = vector.shape_cast %4 : vector<1x1x32xf32> to vector<1x32xf32>
    %6 = vector.broadcast %5 : vector<1x32xf32> to vector<16x32xf32>
    %7 = arith.addf %3, %6 : vector<16x32xf32>
    %c0_7 = arith.constant 0 : index
    %c0_8 = arith.constant 0 : index
    %c0_9 = arith.constant 0 : index
    %8 = vector.load %arg5[%c0_7, %c0_8, %c0_9] : memref<1x16x32xf32, #tpu.memory_space<vmem>>, vector<1x16x32xf32>
    %9 = vector.shape_cast %8 : vector<1x16x32xf32> to vector<16x32xf32>
    %10 = vector.shape_cast %7 : vector<16x32xf32> to vector<1x16x32xf32>
    tpu.vector_store %arg5[%c0_7, %c0_8, %c0_9], %10 {strides = array<i32>} : memref<1x16x32xf32, #tpu.memory_space<vmem>>, vector<1x16x32xf32>,
    return
  }
  func.func @transform_0(%arg0: i32, %arg1: i32) -> (i32, i32) {
    %c0_i32 = arith.constant 0 : i32
    %c0_i32_0 = arith.constant 0 : i32
    return %arg0, %c0_i32 : i32, i32
  }
  func.func @transform_1(%arg0: i32, %arg1: i32) -> (i32, i32, i32) {
    %c0_i32 = arith.constant 0 : i32
    %c0_i32_0 = arith.constant 0 : i32
    %c0_i32_1 = arith.constant 0 : i32
    return %arg1, %c0_i32, %c0_i32_0 : i32, i32, i32
  }
  func.func @transform_2(%arg0: i32, %arg1: i32) -> (i32, i32, i32) {
    %c0_i32 = arith.constant 0 : i32
    %c0_i32_0 = arith.constant 0 : i32
    %c0_i32_1 = arith.constant 0 : i32
    return %arg1, %c0_i32, %c0_i32_0 : i32, i32, i32
  }
  func.func @transform_3(%arg0: i32, %arg1: i32) -> (i32, i32, i32) {
    %c0_i32 = arith.constant 0 : i32
    %c0_i32_0 = arith.constant 0 : i32
    return %arg1, %arg0, %c0_i32 : i32, i32, i32
  }
}

</mosaic_0001>

<bundles_post_ra>
// kernel: fwd_self.5
= control target key start
LH: loop header
LB: loop body
LE: loop exit
PB: predicated region body
PF: predicated region fallthrough
CT: control target
= control target key end

     0   :  { %vm28_vm0 = vcmask 261120   ;;  %s243_s0 = inlined_call_operand.vmem [shape: f32[16,32], index: 0, kind: input, shape index: {}]   ;;  %s244_s1 = inlined_call_operand.vmem [shape: f32[32,32], index: 1, kind: input, shape index: {}]   ;;  %s245_s2 = inlined_call_operand.vmem [shape: f32[1,32], index: 2, kind: input, shape index: {}]   ;;  %s246_s3 = inlined_call_operand.hbm [shape: f32[16,32], index: 3, kind: output, shape index: {}]  }
   0x1   :  { %v17_v0 = vld [vmem:[%s244_s1] sm:$0xff]  ;;  %v18_v1 = vld [vmem:[%s244_s1 + $0x8] sm:$0xff]  ;;  %v19_v2 = vld [vmem:[%s244_s1 + $0x10] sm:$0xff] }
   0x2   :  { %v148_v3 = vpack.c.bf16 %v18_v1, %v17_v0  ;;  %v20_v4 = vld [vmem:[%s244_s1 + $0x18] sm:$0xff]  ;;  %v15_v5 = vld [vmem:[%s243_s0] sm:$0xff] }
   0x3   :  { %v152_v6 = vpack.c.bf16 %v20_v4, %v19_v2  ;;  %145 = vmatprep.mubr.msk.f32.mxu0 %vm28_vm0, %v15_v5 }
   0x4   :  { %8 = vsyncpa [#allocation3], 0  ;;  %149 = vmatprep.subr.bf16.mxu0 %v148_v3  ;;  %v16_v7 = vld [vmem:[%s243_s0 + $0x8] sm:$0xff]  ;;  %v128_v8 = vld [vmem:[%s245_s2] ss:$0 sm:$0xff]  ;;  %s183_s25 = smov [#allocation2]  }
   0x5   :  { %151 = vmatpush3.bf16.msra.mxu0 %v148_v3  ;;  %s117_s26 = sshll.u32 %s183_s25, 4  ;;  %s118_s26 = int_to_ptr.vmem [resolvable:$true] %s117_s26 }
   0x6   :  { %153 = vmatprep.subr.bf16.mxu0 %v152_v6  ;;  %s159_s27 = scalar_lea.vmem %s118_s26, 256  ;;  %p164_p1 = scmp.lt.s32.totalorder %s118_s26, %s118_s26 }
   0x7   :  { %p160_p0 = scmp.ne.s32.totalorder %s118_s26, %s159_s27  ;;  %p165_p2 = scmp.lt.s32.totalorder %s159_s27, %s159_s27 }
   0x9   :  { %155 = vmatpush3.bf16.msra.mxu0 %v152_v6  ;;  %p166_p3 = por %p165_p2, %p164_p1 }
   0xb   :  { %p167_p4 = pnand %p166_p3, %p160_p0 }
   0xc   :  { %146 = vmatmul.mubr.msk.f32.vlgmr.msra.gmra.mrb[0].mxu0 %vm28_vm0, %v16_v7 }
  0xdf   :  { %v147_v9 = vpop.f32.mrb[0].mxu0 }
  0xe0   :  { %v107_v10 = vadd.f32 %v147_v9, %v128_v8  ;;  %v101_v11 = vpop.f32.mrb[1].mxu0 }
  0xe1   :  { %v102_v12 = vadd.f32 %v128_v8, %v101_v11 }
  0xe2   :  { %111 = vst.msk [vmem:[#allocation2 + $0x8] sm:$0xff] %vm28_vm0, %v107_v10 }
  0xe3   :  { %110 = vst.msk [vmem:[#allocation2] sm:$0xff] %vm28_vm0, %v102_v12 }
  0xe4   :  { %170 = shalt.err (!%p167_p4)
}
  0xe5   :  { %s171_s28 = scalar_lea.hbm %s246_s3, 256 }
  0xe6   :  { %p172_p5 = scmp.ne.s32.totalorder %s246_s3, %s171_s28  ;;  %p175_p6 = scmp.lt.u32.totalorder %s171_s28, %s246_s3 }
  0xe8   :  { %p177_p7 = pnand %p175_p6, %p172_p5 }
  0xea   :  { %180 = shalt.err (!%p177_p7)
}
  0xeb   :  { %s184_s6 = smov 128   ;;  %s185_s7 = smov 8  }
  0xec   :  { %123 = dma.vmem_to_hbm [thread:$0]  %s118_s26, 256, %s246_s3, [#allocation3], %s184_s6, %s184_s6, %s185_s7  }
  0xed   :  { %181 = dma.done.wait [#allocation3], 256  }
  0xee   :  { %182 = vsyncadd [#allocation3], 4294967040 }
  0xef   :  { %127 = vsyncpa [#allocation3], 1 }

// kernel: fwd_self.3
= control target key start
LH: loop header
LB: loop body
LE: loop exit
PB: predicated region body
PF: predicated region fallthrough
CT: control target
= control target key end

     0   :  { %8 = vsyncpa [#allocation3], 0  ;;  %s915_s0 = inlined_call_operand.vmem [shape: f32[16,32], index: 0, kind: input, shape index: {}]   ;;  %s916_s1 = inlined_call_operand.hbm [shape: f32[3,32,32], index: 1, kind: input, shape index: {}]   ;;  %s917_s2 = inlined_call_operand.hbm [shape: f32[3,1,32], index: 2, kind: input, shape index: {}]   ;;  %s918_s3 = inlined_call_operand.vmem [shape: f32[3,16,32], index: 3, kind: output, shape index: {}]  }
   0x1   :  { %10 = vsyncpa [#allocation3 + $0x1], 0 }
   0x2   :  { %11 = vsyncpa [#allocation5], 0 }
   0x3   :  { %13 = vsyncpa [#allocation5 + $0x1], 0  ;;  %s741_s12 = smov 0   ;;  %s743_s13 = smov 0  }
   0x4   :  { %s745_s14 = smov 0   ;;  %s747_s15 = smov 0  }
   0x5   :  { %s749_s16 = smov 0   ;;  %s751_s17 = smov 0  }
   0x6 LB: > { %s494_s18 = sadd.s32 4294967295, %s715_s17   ;;  %s28_s19 = sadd.s32 1, %s711_s16  ;;  %s715_s17 = sphi %s751_s17, %s19_s17   ;;  %s711_s16 = sphi %s749_s16, %s930_s16   ;;  %s707_s15 = sphi %s747_s15, %s929_s15   ;;  %s703_s14 = sphi %s745_s14, %s928_s14   ;;  %s699_s13 = sphi %s743_s13, %s927_s13   ;;  %s695_s12 = sphi %s741_s12, %s926_s12  }
   0x7   : > { %p29_p0 = scmp.ge.s32.totalorder %s28_s19, 3  ;;  %s64_s20 = sadd.s32 1, %s703_s14 }
   0x8   : > { %p71_p1 = scmp.ne.s32.totalorder %s703_s14, %s699_s13  ;;  %p72_p2 = scmp.eq.s32.totalorder %s715_s17, 0 }
   0x9   : > { %s932_s19 = smov (%p29_p0, %s28_s19), 0  ;;  %p77_p4 = scmp.ne.s32.totalorder %s699_s13, %s695_s12 }
   0xa   : > { %p777_p3 = por %p72_p2, %p71_p1  ;;  %s61_s22 = ssub.s32 %s711_s16, %s932_s19 }
   0xb   : > { %p78_p5 = scmp.eq.s32.totalorder %s494_s18, 0  ;;  %p62_p6 = scmp.eq.s32.totalorder %s61_s22, 0 }
   0xc   : > { %p550_p8 = scmp.lt.s32.totalorder %s715_s17, 3  ;;  %s793_s25 = sand.u32 1, %s703_s14  }
   0xd   : > { %p784_p7 = por %p78_p5, %p77_p4  ;;  %s512_s26 = sshll.u32 %s711_s16, 9 }
   0xe   : > { %s790_s24 = scalar_select %p62_p6, %s703_s14, %s64_s20  }
   0xf   : > { %s921_s23 = scalar_select %p784_p7, 1, 0 }
  0x10   : > { %s499_s27 = sshll.u32 %s793_s25, 5  ;;  %s800_s30 = scalar_lea.hbm %s916_s1, %s512_s26 }
  0x11   : > { %s168_s4 = scalar_lea.vmem [#allocation2], %s499_s27  ;;  %p804_p9 = pnand %p550_p8, %p777_p3 }
  0x12   : > { %s175_s5 = sshll.u32 %s168_s4, 4  ;;  %s165_s7 = scalar_lea.sflag [#allocation3], %s793_s25  ;;  %s808_s5 = int_to_ptr.vmem [resolvable:$true] %s175_s5 }
  0x13   : > { %s601_s8 = scalar_lea.hbm %s800_s30, 512  ;;  %p603_p11 = pneg %p804_p9 }
  0x14   : > { %p602_p10 = scmp.ne.s32.totalorder %s800_s30, %s601_s8  ;;  %s606_s11 = scalar_lea.hbm %s916_s1, 1536 }
  0x15   : > { %p607_p0 = scmp.lt.u32.totalorder %s800_s30, %s916_s1  ;;  %p608_p1 = scmp.lt.u32.totalorder %s606_s11, %s601_s8 }
  0x16   : > { %p604_p12 = pnand %p603_p11, %p602_p10  ;;  %p610_p3 = scmp.lt.u32.totalorder %s601_s8, %s800_s30 }
  0x17   : > { %p609_p2 = por %p608_p1, %p607_p0 }
  0x18   : > { %p605_p13 = pneg %p604_p12 }
  0x19   : > { %p611_p4 = por %p610_p3, %p609_p2 }
  0x1b   : > { %p612_p5 = pnand %p611_p4, %p605_p13 }
  0x1d   : > { %615 = shalt.err (!%p612_p5)
}
  0x1e   : > { %s616_s20 = scalar_lea.vmem %s808_s5, 512  ;;  %s717_s21 = smov [#allocation2]  }
  0x1f   : > { %p617_p6 = scmp.ne.s32.totalorder %s808_s5, %s616_s20  ;;  %s621_s22 = sshll.u32 %s717_s21, 4  ;;  %s622_s22 = int_to_ptr.vmem [resolvable:$false] %s621_s22 }
  0x20   : > { %s623_s26 = scalar_lea.vmem %s622_s22, 1024  ;;  %p624_p12 = scmp.lt.s32.totalorder %s808_s5, %s622_s22 }
  0x21   : > { %p619_p8 = pnand %p617_p6, %p603_p11  ;;  %p625_p0 = scmp.lt.s32.totalorder %s623_s26, %s616_s20 }
  0x23   : > { %p620_p10 = pneg %p619_p8  ;;  %p626_p1 = por %p625_p0, %p624_p12 }
  0x25   : > { %p627_p2 = pnand %p626_p1, %p620_p10 }
  0x27   : > { %630 = shalt.err (!%p627_p2)
}
  0x28   : > { %s718_s27 = smov 128   ;;  %s719_s28 = smov 8  }
  0x29   : > { %546 = dma.hbm_to_vmem [thread:$0]  (!%p804_p9), %s800_s30, 512, %s808_s5, %s165_s7, %s718_s27, %s718_s27, %s719_s28  }
  0x2a   : > { %p503_p13 = scmp.ge.s32.totalorder %s715_s17, 1  ;;  %p200_p3 = scmp.lt.s32.totalorder %s715_s17, 4 }
  0x2b   : > { %s502_s4 = sshll.u32 %s711_s16, 4  ;;  %s188_s11 = scalar_lea.vmem [#allocation4], %s793_s25 }
  0x2c   : > { %p840_p4 = pnand %p503_p13, %p200_p3  ;;  %s848_s10 = scalar_lea.hbm %s917_s2, %s502_s4 }
  0x2d   : > { %s195_s12 = sshll.u32 %s188_s11, 4  ;;  %s186_s30 = scalar_lea.sflag [#allocation5], %s793_s25  ;;  %s196_s12 = int_to_ptr.vmem [resolvable:$true] %s195_s12 }
  0x2e   : > { %s923_s29 = scalar_select %p840_p4, 1, 0 }
  0x2f   : > { %s631_s5 = scalar_lea.hbm %s848_s10, 16  ;;  %s636_s20 = scalar_lea.hbm %s917_s2, 48 }
  0x30   : > { %p632_p5 = scmp.ne.s32.totalorder %s848_s10, %s631_s5  ;;  %p637_p10 = scmp.lt.u32.totalorder %s848_s10, %s917_s2 }
  0x31   : > { %p638_p12 = scmp.lt.u32.totalorder %s636_s20, %s631_s5  ;;  %p640_p1 = scmp.lt.u32.totalorder %s631_s5, %s848_s10 }
  0x32   : > { %p634_p6 = pnand %p632_p5, %p603_p11 }
  0x33   : > { %p639_p0 = por %p638_p12, %p637_p10 }
  0x34   : > { %p635_p8 = pneg %p634_p6 }
  0x35   : > { %p641_p2 = por %p640_p1, %p639_p0 }
  0x37   : > { %p642_p13 = pnand %p641_p2, %p635_p8 }
  0x39   : > { %645 = shalt.err (!%p642_p13)
}
  0x3a   : > { %s646_s25 = scalar_lea.vmem %s196_s12, 16  ;;  %s720_s26 = smov [#allocation4]  }
  0x3b   : > { %p647_p3 = scmp.ne.s32.totalorder %s196_s12, %s646_s25  ;;  %s651_s27 = sshll.u32 %s720_s26, 4  ;;  %s652_s27 = int_to_ptr.vmem [resolvable:$false] %s651_s27 }
  0x3c   : > { %s653_s28 = scalar_lea.vmem %s652_s27, 32  ;;  %p654_p7 = scmp.lt.s32.totalorder %s196_s12, %s652_s27 }
  0x3d   : > { %p649_p5 = pnand %p647_p3, %p603_p11  ;;  %p655_p4 = scmp.lt.s32.totalorder %s653_s28, %s646_s25 }
  0x3f   : > { %p650_p6 = pneg %p649_p5  ;;  %p656_p10 = por %p655_p4, %p654_p7 }
  0x41   : > { %p657_p12 = pnand %p656_p10, %p650_p6 }
  0x43   : > { %660 = shalt.err (!%p657_p12)
}
  0x44   : > { %549 = dma.hbm_to_vmem [thread:$0]  (!%p804_p9), %s848_s10, 16, %s196_s12, %s186_s30  }
  0x45   : > { %p924_p8 = scmp.ne.s32.totalorder %s923_s29, 0 }
  0x46   : > { %s206_s4 = sand.u32 (!%p924_p8), 1, %s699_s13   ;;  %p925_p11 = scmp.ne.s32.totalorder (!%p924_p8), %s921_s23, 0 }
  0x47   : > { %204 = sbr.rel (%p924_p8) target bundleno = 308 (0x134), region = 32  ;;  %s504_s8 = sshll.u32 (!%p924_p8), %s206_s4, 5 }
  0x48   : > { %s207_s9 = scalar_lea.sflag (!%p924_p8), [#allocation3], %s206_s4  ;;  %s210_s11 = scalar_lea.vmem (!%p924_p8), [#allocation2], %s504_s8 }
  0x4e   : > { %686 = dma.done.wait (%p925_p11), %s207_s9, 512  }
  0x4f   : > { %688 = vsyncadd (%p925_p11), %s207_s9, 4294966784  ;;  %s216_s5 = scalar_lea.sflag [#allocation5], %s206_s4  ;;  %s218_s7 = scalar_lea.vmem [#allocation4], %s206_s4 }
  0x50   : > { %690 = dma.done.wait (%p925_p11), %s216_s5, 16  }
  0x51   : > { %692 = vsyncadd (%p925_p11), %s216_s5, 4294967280  ;;  %vm283_vm0 = vcmask 261120   ;;  %v272_v0 = vld [vmem:[%s210_s11] sm:$0xff]  ;;  %v273_v1 = vld [vmem:[%s210_s11 + $0x8] sm:$0xff]  ;;  %p261_p7 = scmp.lt.s32.totalorder %s707_s15, 2 }
  0x52   : > { %v274_v2 = vld [vmem:[%s210_s11 + $0x10] sm:$0xff]  ;;  %v531_v3 = vpack.c.bf16 %v273_v1, %v272_v0  ;;  %v275_v4 = vld [vmem:[%s210_s11 + $0x18] sm:$0xff]  ;;  %v270_v5 = vld [vmem:[%s915_s0] sm:$0xff] }
  0x53   : > { %v535_v6 = vpack.c.bf16 %v275_v4, %v274_v2  ;;  %528 = vmatprep.mubr.msk.f32.mxu0 %vm283_vm0, %v270_v5  ;;  %v271_v7 = vld [vmem:[%s915_s0 + $0x8] sm:$0xff]  ;;  %s934_s15 = smov (!%p261_p7, %s707_s15), 2  ;;  %v507_v8 = vld [vmem:[%s218_s7] ss:$0 sm:$0xff] }
  0x54   : > { %532 = vmatprep.subr.bf16.mxu0 %v531_v3  ;;  %s513_s12 = sshll.u32 %s934_s15, 4 }
  0x55   : > { %534 = vmatpush3.bf16.msra.mxu0 %v531_v3  ;;  %s268_s20 = scalar_lea.vmem %s918_s3, %s513_s12 }
  0x56   : > { %536 = vmatprep.subr.bf16.mxu0 %v535_v6 }
  0x59   : > { %538 = vmatpush3.bf16.msra.mxu0 %v535_v6 }
  0x5c   : > { %529 = vmatmul.mubr.msk.f32.vlgmr.msra.gmra.mrb[0].mxu0 %vm283_vm0, %v271_v7 }
 0x12f   : > { %v530_v9 = vpop.f32.mrb[0].mxu0 }
 0x130   : > { %v362_v10 = vadd.f32 %v530_v9, %v507_v8  ;;  %v356_v11 = vpop.f32.mrb[1].mxu0 }
 0x131   : > { %v357_v12 = vadd.f32 %v507_v8, %v356_v11 }
 0x132   : > { %366 = vst.msk [vmem:[%s268_s20 + $0x8] sm:$0xff] %vm283_vm0, %v362_v10 }
 0x133   : > { %365 = vst.msk [vmem:[%s268_s20] sm:$0xff] %vm283_vm0, %v357_v12 }
 0x134 PF: > { %s19_s17 = sadd.s32 1, %s715_s17   ;;  %s926_s12 = smov %s699_s13 }
 0x135   : > { %p16_p9 = scmp.ge.s32.totalorder %s19_s17, 5   ;;  %s927_s13 = smov %s703_s14 }
 0x136   : > { %s928_s14 = smov %s790_s24  ;;  %s929_s15 = smov %s711_s16 }
 0x137   : > { %s930_s16 = smov %s932_s19  ;;  %18 = sbr.rel (!%p16_p9) target bundleno = 6 (0x6), region = 88 }
 0x13e   :  { %397 = vsyncpa [#allocation3], 1 }
 0x13f   :  { %399 = vsyncpa [#allocation3 + $0x1], 1 }
 0x140   :  { %400 = vsyncpa [#allocation5], 1 }
 0x141   :  { %402 = vsyncpa [#allocation5 + $0x1], 1 }

// kernel: fwd_self.4
= control target key start
LH: loop header
LB: loop body
LE: loop exit
PB: predicated region body
PF: predicated region fallthrough
CT: control target
= control target key end

     0   :  { %s1140_s9 = smov 0   ;;  %s1142_s10 = smov 0   ;;  %s1283_s0 = inlined_call_operand.vmem [shape: f32[3,2,8,32], index: 0, kind: input, shape index: {}]   ;;  %s1284_s1 = inlined_call_operand.vmem [shape: f32[2,1,8,8], index: 1, kind: input, shape index: {}]   ;;  %s1285_s2 = inlined_call_operand.vmem [shape: f32[2,8,32], index: 2, kind: output, shape index: {}]  }
   0x1   :  { %s1144_s11 = smov 0  }
   0x2 LB: > { %s963_s12 = sadd.s32 4294967295, %s1115_s11   ;;  %s1157_s13 = sadd.s32 1, %s1115_s11   ;;  %s1115_s11 = sphi %s1144_s11, %s1288_s11   ;;  %s1111_s10 = sphi %s1142_s10, %s1287_s10   ;;  %s1107_s9 = sphi %s1140_s9, %s1286_s9  }
   0x3   : > { %s16_s14 = ssub.s32 %s1115_s11, %s1157_s13  ;;  %s19_s15 = sadd.s32 1, %s1111_s10 }
   0x4   : > { %p17_p0 = scmp.eq.s32.totalorder %s16_s14, 0  ;;  %p26_p1 = scmp.ne.s32.totalorder %s1111_s10, %s1107_s9 }
   0x5   : > { %p27_p2 = scmp.eq.s32.totalorder %s1115_s11, 0  ;;  %p966_p4 = scmp.ge.s32.totalorder %s1115_s11, 2 }
   0x6   : > { %s1166_s16 = scalar_select %p17_p0, %s1111_s10, %s19_s15  }
   0x7   : > { %p28_p3 = por %p27_p2, %p26_p1  ;;  %104 = sbr.rel (%p966_p4) target bundleno = 21 (0x15), region = 16 }
   0xe   : > { %107 = sbr.rel (!%p28_p3) target bundleno = 21 (0x15), region = 20  ;;  %s109_s17 = sand.u32 (%p28_p3), 1, %s1111_s10  }
   0xf   : > { %s967_s18 = sshll.u32 (%p28_p3), %s1115_s11, 3  ;;  %s1043_s19 = smul.u32 (%p28_p3), 24, %s109_s17 }
  0x10   : > { %s113_s22 = scalar_lea.vmem (%p28_p3), %s1283_s0, %s967_s18 }
  0x11   : > { %v145_v0 = vld [vmem:[%s113_s22] sm:$0xff] (%p28_p3)  ;;  %v147_v1 = vld [vmem:[%s113_s22 + $0x10] sm:$0xff] (%p28_p3)  ;;  %s111_s23 = scalar_lea.vmem (%p28_p3), [#allocation2], %s1043_s19 }
  0x12   : > { %v149_v2 = vld [vmem:[%s113_s22 + $0x20] sm:$0xff] (%p28_p3)  ;;  %146 = vst [vmem:[%s111_s23] sm:$0xff] (%p28_p3), %v145_v0  ;;  %148 = vst [vmem:[%s111_s23 + $0x8] sm:$0xff] (%p28_p3), %v147_v1 }
  0x13   : > { %150 = vst [vmem:[%s111_s23 + $0x10] sm:$0xff] (%p28_p3), %v149_v2 }
  0x15 PF: > { %p968_p5 = scmp.ge.s32.totalorder %s1115_s11, 1  ;;  %p162_p6 = scmp.lt.s32.totalorder %s1115_s11, 3 }
  0x17   : > { %p163_p7 = pnand %p968_p5, %p162_p6 }
  0x18   : > { %s169_s24 = sand.u32 (!%p163_p7), 1, %s1107_s9   ;;  %v1117_v3 = vmov (!%p163_p7), 0.0   ;;  %vm1118_vm0 = vmmov (!%p163_p7), 0   ;;  %vm208_vm1 = vcmask (!%p163_p7), 64512   ;;  %p193_p8 = scmp.lt.s32.totalorder (!%p163_p7), %s963_s12, 1  ;;  %vm886_vm3 = vcmask (!%p163_p7), 130048  }
  0x19   : > { %166 = sbr.rel (%p163_p7) target bundleno = 1477 (0x5c5), region = 62  ;;  %1003 = vmatprep.subr.mxu0 (!%p163_p7), %v1117_v3  ;;  %1005 = vmatprep.mubr.msk.f32.mxu0 (!%p163_p7), %vm1118_vm0, %v1117_v3  ;;  %s1119_s3 = smov (!%p163_p7), 120   ;;  %vm888_vm4 = vcmask (!%p163_p7), 195584   ;;  %vm890_vm5 = vcmask (!%p163_p7), 261120  }
  0x1a   : > { %s1044_s25 = smul.u32 (!%p163_p7), 24, %s169_s24  ;;  %1008 = vmatprep.subr.mxu1 (!%p163_p7), %v1117_v3  ;;  %1010 = vmatprep.mubr.msk.f32.mxu1 (!%p163_p7), %vm1118_vm0, %v1117_v3  ;;  %s1120_s4 = smov (!%p163_p7), 112  }
  0x1b   : > { %s1121_s5 = smov (!%p163_p7), 104   ;;  %s1122_s6 = smov (!%p163_p7), 8  }
  0x1c   : > { %s1183_s26 = scalar_lea.vmem (!%p163_p7), [#allocation2], %s1044_s25  ;;  %s1123_s7 = smov (!%p163_p7), 16  }
  0x1d   : > { %v971_v4 = vld [vmem:[%s1183_s26 + $0x8] sm:$0xff] (!%p163_p7)  ;;  %v201_v5 = vld [vmem:[%s1183_s26] sm:$0xff] (!%p163_p7)  ;;  %v1217_v17 = vld [vmem:[%s1183_s26 + $0x10] sm:$0xff] (!%p163_p7)  ;;  %s1124_s8 = smov (!%p163_p7), 24  }
  0x1e   : > { %1004 = vmatpush3.xpose.msk.msra.mxu0 (!%p163_p7), %vm208_vm1, %v971_v4  ;;  %373 = vrot.lane.b32.xlu1 (!%p163_p7), %v971_v4, %s1119_s3 }
  0x1f   : > { %1018 = vmatprep.subr.mxu0 (!%p163_p7), %v1117_v3  ;;  %1009 = vmatpush3.msra.mxu1 (!%p163_p7), %v1217_v17 }
  0x20   : > { %s1290_s12 = smov (!%p193_p8, %s963_s12), 1  ;;  %1013 = vmatprep.subr.mxu1 %v1117_v3 }
  0x21   : > { %1006 = vmatmul.mubr.msk.f32.vlgmr.msra.gmra.mrb[0].mxu0 %vm208_vm1, %v201_v5  ;;  %s969_s27 = sshll.u32 %s1290_s12, 3 }
  0x22   : > { %1020 = vmatprep.mubr.msk.f32.mxu0 %vm1118_vm0, %v1117_v3  ;;  %s196_s30 = scalar_lea.vmem %s1284_s1, %s969_s27  ;;  %371 = vrot.lane.b32.xlu1 %v201_v5, %s1119_s3  ;;  %s200_s14 = scalar_lea.vmem %s1285_s2, %s969_s27 }
  0x23   : > { %v1204_v6 = vld [vmem:[%s196_s30] sm:$0xff] }
  0x24   : > { %vm207_vm2 = vcmp.ne.f32.partialorder %v1204_v6, 0.0 }
  0x26   : > { %539 = vrot.lane.b32.xlu1 %v201_v5, %s1120_s4 }
  0x2a   : > { %708 = vrot.lane.b32.xlu1 %v971_v4, %s1121_s5 }
  0x2e   : > { %706 = vrot.lane.b32.xlu1 %v201_v5, %s1121_s5 }
  0x90   : > { %v374_v18 = vpop.permute.xlu1 %373 }
  0x94   : > { %v372_v20 = vpop.permute.xlu1 %371 }
  0x98   : > { %v540_v22 = vpop.permute.xlu1 %539 }
  0x9c   : > { %v709_v25 = vpop.permute.xlu1 %708 }
  0xa0   : > { %v707_v26 = vpop.permute.xlu1 %706 }
  0xf4   : > { %v281_v7 = vpop.f32.mrb[0].mxu0 }
  0xf5   : > { %v285_v8 = vmul.f32 0.35355338, %v281_v7  ;;  %v1007_v9 = vpop.f32.mrb[1].mxu0 }
  0xf7   : > { %v286_v10 = vsel %vm207_vm2, %v285_v8, -1e+09 }
  0xf8   : > { %v287_v11 = vsel %vm208_vm1, %v286_v10, -inf }
  0xf9   : > { %288 = vmax.xlane.f32.xlu0 %v287_v11 }
 0x186   : > { %v289_v12 = vpop.xlane.xlu0 %288 }
 0x187   : > { %v290_v13 = vsub.f32 %v286_v10, %v289_v12 }
 0x189   : > { %v291_v14 = vmul.f32 1.442695, %v290_v13 }
 0x18b   : > { %1077 = vpow2.f32 %v291_v14 }
 0x195   : > { %v1078_v15 = vpop.eup %1077 }
 0x196   : > { %v293_v16 = vsel %vm208_vm1, %v1078_v15, 0.0 }
 0x197   : > { %294 = vadd.xlane.f32.xlu0 %v293_v16 }
 0x1ad   : > { %541 = vrot.lane.b32.xlu0 %v971_v4, %s1120_s4 }
 0x224   : > { %v295_v19 = vpop.xlane.xlu0 %294 }
 0x225   : > { %1079 = vrcp.f32 %v295_v19 }
 0x228   : > { %v542_v24 = vpop.permute.xlu0 %541 }
 0x22f   : > { %v1080_v21 = vpop.eup %1079 }
 0x230   : > { %v297_v23 = vmul.f32 %v1080_v21, %v1078_v15 }
 0x232   : > { %1011 = vmatmul.mubr.msk.f32.vlgmr.msra.gmra.mrb[0].mxu1 %vm208_vm1, %v297_v23 }
 0x233   : > { %1014 = vmatpush3.xpose.msk.msra.mxu1 %vm208_vm1, %v374_v18  ;;  %1015 = vmatprep.mubr.msk.f32.mxu1 %vm1118_vm0, %v1117_v3 }
 0x234   : > { %1023 = vmatprep.subr.mxu1 %v1117_v3 }
 0x236   : > { %1016 = vmatmul.mubr.msk.f32.vlgmr.msra.gmra.mrb[2].mxu1 %vm208_vm1, %v372_v20 }
 0x237   : > { %1024 = vmatpush3.xpose.msk.msra.mxu1 %vm208_vm1, %v542_v24  ;;  %1025 = vmatprep.mubr.msk.f32.mxu1 %vm1118_vm0, %v1117_v3 }
 0x238   : > { %1033 = vmatprep.subr.mxu1 %v1117_v3 }
 0x23a   : > { %1026 = vmatmul.mubr.msk.f32.vlgmr.msra.gmra.mrb[4].mxu1 %vm208_vm1, %v540_v22 }
 0x23b   : > { %1034 = vmatpush3.xpose.msk.msra.mxu1 %vm208_vm1, %v709_v25  ;;  %1035 = vmatprep.mubr.msk.f32.mxu1 %vm1118_vm0, %v1117_v3 }
 0x23e   : > { %1036 = vmatmul.mubr.msk.f32.vlgmr.msra.gmra.mrb[6].mxu1 %vm208_vm1, %v707_v26 }
 0x305   : > { %v1237_v27 = vpop.f32.mrb[0].mxu1 }
 0x306   : > { %v1012_v28 = vpop.f32.mrb[1].mxu1 }
 0x309   : > { %v445_v29 = vpop.f32.mrb[2].mxu1 }
 0x30a   : > { %v449_v30 = vmul.f32 0.35355338, %v445_v29  ;;  %v1017_v31 = vpop.f32.mrb[3].mxu1 }
 0x30c   : > { %v450_v32 = vsel %vm207_vm2, %v449_v30, -1e+09 }
 0x30d   : > { %v613_v33 = vpop.f32.mrb[4].mxu1  ;;  %v451_v34 = vsel %vm208_vm1, %v450_v32, -inf }
 0x30e   : > { %v617_v35 = vmul.f32 0.35355338, %v613_v33  ;;  %452 = vmax.xlane.f32.xlu1 %v451_v34  ;;  %v1027_v36 = vpop.f32.mrb[5].mxu1 }
 0x310   : > { %v618_v37 = vsel %vm207_vm2, %v617_v35, -1e+09 }
 0x311   : > { %v780_v38 = vpop.f32.mrb[6].mxu1  ;;  %v619_v39 = vsel %vm208_vm1, %v618_v37, -inf }
 0x312   : > { %v784_v40 = vmul.f32 0.35355338, %v780_v38  ;;  %620 = vmax.xlane.f32.xlu0 %v619_v39  ;;  %v1037_v41 = vpop.f32.mrb[7].mxu1 }
 0x314   : > { %v785_v42 = vsel %vm207_vm2, %v784_v40, -1e+09 }
 0x315   : > { %v786_v43 = vsel %vm208_vm1, %v785_v42, -inf }
 0x316   : > { %787 = vmax.xlane.f32.xlu1 %v786_v43 }
 0x39b   : > { %v453_v44 = vpop.xlane.xlu1 %452 }
 0x39c   : > { %v454_v45 = vsub.f32 %v450_v32, %v453_v44 }
 0x39e   : > { %v455_v46 = vmul.f32 1.442695, %v454_v45 }
 0x39f   : > { %v621_v47 = vpop.xlane.xlu0 %620 }
 0x3a0   : > { %1081 = vpow2.f32 %v455_v46  ;;  %v622_v48 = vsub.f32 %v618_v37, %v621_v47 }
 0x3a2   : > { %v623_v49 = vmul.f32 1.442695, %v622_v48 }
 0x3a3   : > { %v788_v54 = vpop.xlane.xlu1 %787 }
 0x3a4   : > { %1083 = vpow2.f32 %v623_v49  ;;  %v789_v55 = vsub.f32 %v785_v42, %v788_v54 }
 0x3a6   : > { %v790_v56 = vmul.f32 1.442695, %v789_v55 }
 0x3a8   : > { %1085 = vpow2.f32 %v790_v56 }
 0x3aa   : > { %v1082_v50 = vpop.eup %1081 }
 0x3ab   : > { %v457_v51 = vsel %vm208_vm1, %v1082_v50, 0.0 }
 0x3ac   : > { %458 = vadd.xlane.f32.xlu1 %v457_v51 }
 0x3ae   : > { %v1084_v52 = vpop.eup %1083 }
 0x3af   : > { %v625_v53 = vsel %vm208_vm1, %v1084_v52, 0.0 }
 0x3b0   : > { %626 = vadd.xlane.f32.xlu0 %v625_v53 }
 0x3b2   : > { %v1086_v57 = vpop.eup %1085 }
 0x3b3   : > { %v792_v58 = vsel %vm208_vm1, %v1086_v57, 0.0 }
 0x3bd   : > { %630 = vrot.lane.b32.xlu1 %v1217_v17, %s1120_s4 }
 0x3c6   : > { %463 = vrot.lane.b32.xlu0 %v1217_v17, %s1119_s3 }
 0x3e1   : > { %793 = vadd.xlane.f32.xlu1 %v792_v58 }
 0x3f2   : > { %797 = vrot.lane.b32.xlu1 %v1217_v17, %s1121_s5 }
 0x439   : > { %v459_v59 = vpop.xlane.xlu1 %458 }
 0x43a   : > { %1087 = vrcp.f32 %v459_v59 }
 0x43d   : > { %v627_v60 = vpop.xlane.xlu0 %626  ;;  %v631_v0 = vpop.permute.xlu1 %630 }
 0x43e   : > { %1089 = vrcp.f32 %v627_v60 }
 0x441   : > { %v464_v61 = vpop.permute.xlu0 %463 }
 0x442   : > { %1019 = vmatpush3.msra.mxu0 %v464_v61 }
 0x443   : > { %1028 = vmatprep.subr.mxu0 %v1117_v3 }
 0x444   : > { %v1088_v62 = vpop.eup %1087 }
 0x445   : > { %v461_v63 = vmul.f32 %v1088_v62, %v1082_v50 }
 0x447   : > { %1021 = vmatmul.mubr.msk.f32.vlgmr.msra.gmra.mrb[2].mxu0 %vm208_vm1, %v461_v63 }
 0x448   : > { %v1090_v1 = vpop.eup %1089  ;;  %1029 = vmatpush3.msra.mxu0 %v631_v0  ;;  %1030 = vmatprep.mubr.msk.f32.mxu0 %vm1118_vm0, %v1117_v3 }
 0x449   : > { %v629_v2 = vmul.f32 %v1090_v1, %v1084_v52  ;;  %1038 = vmatprep.subr.mxu0 %v1117_v3 }
 0x44b   : > { %1031 = vmatmul.mubr.msk.f32.vlgmr.msra.gmra.mrb[4].mxu0 %vm208_vm1, %v629_v2 }
 0x44c   : > { %1040 = vmatprep.mubr.msk.f32.mxu0 %vm1118_vm0, %v1117_v3 }
 0x46e   : > { %v794_v4 = vpop.xlane.xlu1 %793 }
 0x46f   : > { %1091 = vrcp.f32 %v794_v4 }
 0x472   : > { %v798_v5 = vpop.permute.xlu1 %797 }
 0x473   : > { %1039 = vmatpush3.msra.mxu0 %v798_v5 }
 0x479   : > { %v1092_v6 = vpop.eup %1091 }
 0x47a   : > { %v796_v7 = vmul.f32 %v1092_v6, %v1086_v57 }
 0x47c   : > { %1041 = vmatmul.mubr.msk.f32.vlgmr.msra.gmra.mrb[6].mxu0 %vm208_vm1, %v796_v7 }
 0x51a   : > { %v535_v8 = vpop.f32.mrb[2].mxu0 }
 0x51b   : > { %874 = vrot.lane.b32.xlu0 %v535_v8, %s1122_s6  ;;  %v1022_v9 = vpop.f32.mrb[3].mxu0 }
 0x51e   : > { %v702_v10 = vpop.f32.mrb[4].mxu0 }
 0x51f   : > { %878 = vrot.lane.b32.xlu1 %v702_v10, %s1123_s7  ;;  %v1032_v11 = vpop.f32.mrb[5].mxu0 }
 0x54f   : > { %v869_v12 = vpop.f32.mrb[6].mxu0 }
 0x550   : > { %882 = vrot.lane.b32.xlu0 %v869_v12, %s1124_s8  ;;  %v1042_v3 = vpop.f32.mrb[7].mxu0 }
 0x58d   : > { %v875_v13 = vpop.permute.xlu0 %874 }
 0x58e   : > { %v885_v15 = vsel %vm208_vm1, %v1237_v27, %v875_v13 }
 0x591   : > { %v879_v14 = vpop.permute.xlu1 %878 }
 0x592   : > { %v887_v16 = vsel %vm886_vm3, %v885_v15, %v879_v14 }
 0x5c2   : > { %v883_v17 = vpop.permute.xlu0 %882 }
 0x5c3   : > { %v889_v18 = vsel %vm888_vm4, %v887_v16, %v883_v17 }
 0x5c4   : > { %891 = vst.msk [vmem:[%s200_s14] sm:$0xff] %vm890_vm5, %v889_v18 }
 0x5c5 PF: > { %p9_p9 = scmp.ge.s32.totalorder %s1157_s13, 4   ;;  %s1286_s9 = smov %s1111_s10 }
 0x5c6   : > { %s1287_s10 = smov %s1166_s16  ;;  %s1288_s11 = smov %s1157_s13 }
 0x5c7   :  { %11 = sbr.rel (!%p9_p9) target bundleno = 2 (0x2), region = 106 }

</bundles_post_ra>
